<compile_context>
chip_gen: v7x
topology: tpu7x:2x2x1
jax: 0.10.0
libtpu: 0.0.40
codegen_flags: <defaults>
</compile_context>

<pallas_src>
import functools

import jax
import jax.numpy as jnp
from jax.experimental import pallas as pl
from jax.experimental.pallas import tpu as pltpu


def _round_up(x, m):
    return (x + m - 1) // m * m


def _lstm_enc_chunk_kernel(emb_ref, lens_ref, wih_ref, whh_ref, bias_ref,
                           hout_ref, gx_ref, h_ref, c_ref):
    """One (encoder, time-chunk) grid step of the packed-LSTM recurrence.

    Grid = (2, n_chunks): axis 0 = encoder (x1 / x2), "parallel"; axis 1 = time
    chunk, "arbitrary" (h/c carried in VMEM scratch across chunks).

    emb_ref : (1, Lc*Bp, E) bf16   time-major embedding chunk (this encoder)
    lens_ref: (1, Bp, 1)    int32  true lengths (descending-sorted order)
    wih_ref : (E, 4Hp)      bf16   W_ih^T, per-gate zero-padded to lane tiles
    whh_ref : (Hp, 4Hp)     bf16   W_hh^T, per-gate zero-padded
    bias_ref: (1, 4Hp)      f32    b_ih + b_hh, per-gate zero-padded
    hout_ref: (1, Bp, Hp)   f32    final hidden state of this encoder
    gx_ref  : (Lc*Bp, 4Hp)  f32    scratch: input-projection preactivations
    h_ref/c_ref: (Bp, Hp)   f32    scratch: recurrent state (persists per core)
    """
    chunk = pl.program_id(1)
    Bp, Hp = h_ref.shape
    Lc = gx_ref.shape[0] // Bp

    @pl.when(chunk == 0)
    def _():
        h_ref[...] = jnp.zeros_like(h_ref)
        c_ref[...] = jnp.zeros_like(c_ref)

    # (1) One full-occupancy bf16 MXU pass for every time step in this chunk.
    #     f32 accumulation; gx kept in f32 scratch for recurrence accuracy.
    #     TODO(synk): on v7x a bf16 gx scratch would halve its VMEM share.
    gx_ref[...] = (
        jnp.dot(emb_ref[0], wih_ref[...], preferred_element_type=jnp.float32)
        + bias_ref[...])

    lens = lens_ref[0]                      # (Bp, 1) int32
    whh = whh_ref[...]                      # loop-invariant bf16 weights
    t0 = chunk * Lc                         # global time offset of this chunk

    def step(i, carry):
        h, c = carry
        base = pl.multiple_of(i * Bp, Bp)   # sublane-aligned slice
        gates = gx_ref[pl.ds(base, Bp), :] + jnp.dot(
            h.astype(whh.dtype), whh, preferred_element_type=jnp.float32)
        # PyTorch gate order i, f, g, o.  Hp is a lane-tile multiple, so each
        # gate slice is a whole 128-lane window (no sub-vreg shuffles).
        i_g = jax.nn.sigmoid(gates[:, 0 * Hp:1 * Hp])
        f_g = jax.nn.sigmoid(gates[:, 1 * Hp:2 * Hp])
        g_g = jnp.tanh(gates[:, 2 * Hp:3 * Hp])
        o_g = jax.nn.sigmoid(gates[:, 3 * Hp:4 * Hp])
        c_new = f_g * c + i_g * g_g
        h_new = o_g * jnp.tanh(c_new)
        # pack_padded_sequence semantics: state freezes once t >= length.
        valid = (t0 + i) < lens             # (Bp, 1) bool
        return jnp.where(valid, h_new, h), jnp.where(valid, c_new, c)

    unroll = True if Lc <= 8 else 4
    h, c = jax.lax.fori_loop(0, Lc, step, (h_ref[...], c_ref[...]),
                             unroll=unroll)
    h_ref[...] = h
    c_ref[...] = c
    hout_ref[0] = h                         # lane-dense (Bp, Hp) store


@functools.partial(jax.jit, static_argnames=("time_chunk",))
def lstm_dual_enc_forward(x1, x1_l, x2, x2_l, emb_table, w_ih, w_hh,
                          b_ih, b_hh, m_mat, b_scalar, *, time_chunk=None):
    """x1, x2: (B, L) int32 token ids; x*_l: (B,) int32 lengths. Returns (B,)."""
    B, L = x1.shape
    E = emb_table.shape[1]
    H = m_mat.shape[0]

    Bp = _round_up(B, 8)                    # sublane-aligned batch rows
    Hp = _round_up(H, 128)                  # lane-aligned hidden (gate slabs)

    # Time-chunk size: largest chunk under a VMEM budget unless overridden.
    if time_chunk is None:
        per_t = Bp * (2 * E * 2 + 4 * Hp * 4)   # dbl-buffered bf16 emb + f32 gx
        Lc = max(1, min(L, (12 << 20) // max(per_t, 1)))
    else:
        Lc = max(1, min(int(time_chunk), L))
    if (Lc * Bp) % 16 != 0:                 # bf16 sublane tile is 16 rows
        Lc += 1
    L_pad = _round_up(L, Lc)
    n_chunks = L_pad // Lc

    # Independent descending length sorts, exactly as in the original forward.
    p1 = jnp.argsort(-x1_l)
    p2 = jnp.argsort(-x2_l)

    def pad_sorted(x, lens):
        xp = jnp.full((Bp, L_pad), 1, x.dtype)          # token 1 == padding_idx
        xp = xp.at[:B, :L].set(x)
        lp = jnp.zeros((Bp,), jnp.int32).at[:B].set(lens.astype(jnp.int32))
        return xp, lp

    x1p, l1p = pad_sorted(x1[p1], x1_l[p1])
    x2p, l2p = pad_sorted(x2[p2], x2_l[p2])
    x_all = jnp.stack([x1p, x2p], axis=0)               # (2, Bp, L_pad)
    lens_all = jnp.stack([l1p, l2p], axis=0).reshape(2, Bp, 1)

    # Embedding lookup (padding_idx=1 row of emb_table is zero); dropout is
    # identity in eval mode.  bf16 MXU operands + halved VMEM/HBM emb traffic.
    emb = jnp.take(emb_table, x_all, axis=0).astype(jnp.bfloat16)  # (2,Bp,Lp,E)
    emb_tm = jnp.transpose(emb, (0, 2, 1, 3)).reshape(2, L_pad * Bp, E)

    # Gate-padded weights: each of the 4 gate blocks is zero-padded H -> Hp so
    # gate slices in the kernel are full lane tiles.  Padded gate lanes stay
    # exactly zero through the recurrence (zero W/b => g = tanh(0) = 0, c = 0).
    def pad_gates(w):                                    # w: (4H, X)
        X = w.shape[1]
        w4 = jnp.pad(w.reshape(4, H, X), ((0, 0), (0, Hp - H), (0, 0)))
        return w4.reshape(4 * Hp, X)

    wih_t = pad_gates(w_ih).T.astype(jnp.bfloat16)                    # (E, 4Hp)
    whh_t = jnp.pad(pad_gates(w_hh), ((0, 0), (0, Hp - H))).T.astype(
        jnp.bfloat16)                                                 # (Hp, 4Hp)
    bias_2d = pad_gates((b_ih + b_hh).reshape(4 * H, 1)).reshape(1, 4 * Hp)
    bias_2d = bias_2d.astype(jnp.float32)

    # Explicit scoped-VMEM budget (emb chunk dbl-buffered + gx + weights +
    # state + output + headroom); defaults are far below physical VMEM.
    need = (2 * (Lc * Bp * E * 2 + Bp * Hp * 4 + Bp * 4
                 + E * 4 * Hp * 2 + Hp * 4 * Hp * 2 + 4 * Hp * 4)
            + Lc * Bp * 4 * Hp * 4 + 2 * Bp * Hp * 4)
    vmem_limit = int(min(128 << 20, max(need + (4 << 20), 16 << 20)))

    h_all = pl.pallas_call(
        _lstm_enc_chunk_kernel,
        out_shape=jax.ShapeDtypeStruct((2, Bp, Hp), jnp.float32),
        grid_spec=pltpu.PrefetchScalarGridSpec(
            num_scalar_prefetch=0,
            grid=(2, n_chunks),
            in_specs=[
                pl.BlockSpec((1, Lc * Bp, E), lambda e, c: (e, c, 0)),
                pl.BlockSpec((1, Bp, 1), lambda e, c: (e, 0, 0)),
                pl.BlockSpec((E, 4 * Hp), lambda e, c: (0, 0)),
                pl.BlockSpec((Hp, 4 * Hp), lambda e, c: (0, 0)),
                pl.BlockSpec((1, 4 * Hp), lambda e, c: (0, 0)),
            ],
            out_specs=pl.BlockSpec((1, Bp, Hp), lambda e, c: (e, 0, 0)),
            scratch_shapes=[
                pltpu.VMEM((Lc * Bp, 4 * Hp), jnp.float32),   # gx chunk
                pltpu.VMEM((Bp, Hp), jnp.float32),            # h carry
                pltpu.VMEM((Bp, Hp), jnp.float32),            # c carry
            ],
        ),
        compiler_params=pltpu.CompilerParams(
            dimension_semantics=("parallel", "arbitrary"),
            vmem_limit_bytes=vmem_limit),
    )(emb_tm, lens_all, wih_t, whh_t, bias_2d)

    # Bilinear head (tiny) in the wrapper; orig_idx = reversed(range(B))
    # applied to both c and r == reversing the per-pair scores.
    c_h = h_all[0, :B, :H]
    r_h = h_all[1, :B, :H]
    b = jnp.asarray(b_scalar, jnp.float32).reshape(())
    scores = jnp.sum((c_h @ m_mat) * r_h, axis=-1) + b
    return scores[::-1]


# ----------------------------- pure-JAX references -----------------------------

def _reference_encode(x, lens, emb_table, w_ih, w_hh, b_ih, b_hh, bf16_matmul):
    B, L = x.shape
    H = w_hh.shape[1]
    e = jnp.take(emb_table, x, axis=0)                       # (B, L, E)
    wih_t, whh_t = w_ih.T, w_hh.T
    if bf16_matmul:
        e = e.astype(jnp.bfloat16)
        wih_t = wih_t.astype(jnp.bfloat16)
        whh_t = whh_t.astype(jnp.bfloat16)
    gx = jnp.dot(e.reshape(B * L, -1), wih_t,
                 preferred_element_type=jnp.float32).reshape(B, L, 4 * H)
    gx = gx + (b_ih + b_hh)
    h = jnp.zeros((B, H), jnp.float32)
    c = jnp.zeros((B, H), jnp.float32)
    for t in range(L):
        hh = h.astype(whh_t.dtype)
        gates = gx[:, t] + jnp.dot(hh, whh_t, preferred_element_type=jnp.float32)
        i_g = jax.nn.sigmoid(gates[:, :H])
        f_g = jax.nn.sigmoid(gates[:, H:2 * H])
        g_g = jnp.tanh(gates[:, 2 * H:3 * H])
        o_g = jax.nn.sigmoid(gates[:, 3 * H:])
        c_new = f_g * c + i_g * g_g
        h_new = o_g * jnp.tanh(c_new)
        valid = (t < lens)[:, None]
        h = jnp.where(valid, h_new, h)
        c = jnp.where(valid, c_new, c)
    return h


def reference_forward(x1, x1_l, x2, x2_l, emb_table, w_ih, w_hh, b_ih, b_hh,
                      m_mat, b_scalar, bf16_matmul=False):
    p1 = jnp.argsort(-x1_l)
    p2 = jnp.argsort(-x2_l)
    c_h = _reference_encode(x1[p1], x1_l[p1], emb_table, w_ih, w_hh,
                            b_ih, b_hh, bf16_matmul)[::-1]
    r_h = _reference_encode(x2[p2], x2_l[p2], emb_table, w_ih, w_hh,
                            b_ih, b_hh, bf16_matmul)[::-1]
    b = jnp.asarray(b_scalar, jnp.float32).reshape(())
    return jnp.sum((c_h @ m_mat) * r_h, axis=-1) + b


if __name__ == "__main__":
    # Small shapes consistent with the module.
    n_vocab, emb_dim, h_dim = 50, 32, 32
    batch, seq_len, pad_idx = 4, 8, 1

    key = jax.random.PRNGKey(0)
    ks = jax.random.split(key, 10)

    emb_table = jax.random.normal(ks[0], (n_vocab, emb_dim), jnp.float32) * 0.5
    emb_table = emb_table.at[pad_idx].set(0.0)          # padding_idx = 1 row

    w_ih = jax.random.normal(ks[1], (4 * h_dim, emb_dim), jnp.float32) * 0.1
    w_hh = jax.random.normal(ks[2], (4 * h_dim, h_dim), jnp.float32) * 0.1
    b_ih = jax.random.normal(ks[3], (4 * h_dim,), jnp.float32) * 0.1
    b_hh = jax.random.normal(ks[4], (4 * h_dim,), jnp.float32) * 0.1
    # init_params_(): forget-gate biases set to 2 on both bias vectors.
    b_ih = b_ih.at[h_dim:2 * h_dim].set(2.0)
    b_hh = b_hh.at[h_dim:2 * h_dim].set(2.0)

    m_mat = jax.random.normal(ks[5], (h_dim, h_dim), jnp.float32) * 0.15
    b_scalar = jnp.float32(0.0)                          # nn.Parameter([0])

    x1 = jax.random.randint(ks[6], (batch, seq_len), 2, n_vocab, jnp.int32)
    x2 = jax.random.randint(ks[7], (batch, seq_len), 2, n_vocab, jnp.int32)
    x1_l = jax.random.randint(ks[8], (batch,), 1, seq_len + 1, jnp.int32)
    x2_l = jax.random.randint(ks[9], (batch,), 1, seq_len + 1, jnp.int32)
    pos = jnp.arange(seq_len)[None, :]
    x1 = jnp.where(pos < x1_l[:, None], x1, pad_idx)
    x2 = jnp.where(pos < x2_l[:, None], x2, pad_idx)

    # time_chunk=4 -> 2 time chunks: exercises the chunked h/c carry path.
    o = lstm_dual_enc_forward(x1, x1_l, x2, x2_l, emb_table, w_ih, w_hh,
                              b_ih, b_hh, m_mat, b_scalar, time_chunk=4)
    jax.block_until_ready(o)

    ref_same_policy = reference_forward(x1, x1_l, x2, x2_l, emb_table, w_ih,
                                        w_hh, b_ih, b_hh, m_mat, b_scalar,
                                        bf16_matmul=True)
    ref_f32 = reference_forward(x1, x1_l, x2, x2_l, emb_table, w_ih, w_hh,
                                b_ih, b_hh, m_mat, b_scalar, bf16_matmul=False)
    assert o.shape == (batch,)
    assert jnp.allclose(o, ref_same_policy, atol=1e-3, rtol=1e-3), (o, ref_same_policy)
    assert jnp.allclose(o, ref_f32, atol=5e-2, rtol=5e-2), (o, ref_f32)

    print("KERNEL_OK")
</pallas_src>

<mosaic_0001>
module attributes {stable_mosaic.version = 11 : i64} {
  func.func @_lstm_enc_chunk_kernel(%arg0: i32, %arg1: i32, %arg2: memref<1x32x32xbf16, #tpu.memory_space<vmem>>, %arg3: memref<1x8x1xi32, #tpu.memory_space<vmem>>, %arg4: memref<32x512xbf16, #tpu.memory_space<vmem>>, %arg5: memref<128x512xbf16, #tpu.memory_space<vmem>>, %arg6: memref<1x512xf32, #tpu.memory_space<vmem>>, %arg7: memref<1x8x128xf32, #tpu.memory_space<vmem>>, %arg8: memref<32x512xf32, #tpu.memory_space<vmem>>, %arg9: memref<8x128xf32, #tpu.memory_space<vmem>>, %arg10: memref<8x128xf32, #tpu.memory_space<vmem>>) attributes {dimension_semantics = [#tpu.dimension_semantics<parallel>, #tpu.dimension_semantics<arbitrary>], iteration_bounds = array<i64: 2, 2>, scalar_prefetch = 0 : i64, scratch_operands = 3 : i64, tpu.core_type = #tpu.core_type<tc>, window_params = [{transform_indices = @transform_0, window_bounds = array<i64: 1, 32, 32>}, {transform_indices = @transform_1, window_bounds = array<i64: 1, 8, 1>}, {pipeline_mode = #tpu.pipeline_mode<synchronous>, transform_indices = @transform_2, window_bounds = array<i64: 32, 512>}, {pipeline_mode = #tpu.pipeline_mode<synchronous>, transform_indices = @transform_3, window_bounds = array<i64: 128, 512>}, {pipeline_mode = #tpu.pipeline_mode<synchronous>, transform_indices = @transform_4, window_bounds = array<i64: 1, 512>}, {transform_indices = @transform_5, window_bounds = array<i64: 1, 8, 128>}]} {
    %c0_i32 = arith.constant 0 : i32
    %0 = arith.cmpi eq, %arg1, %c0_i32 : i32
    %1 = arith.extui %0 : i1 to i32
    %c0_i32_0 = arith.constant 0 : i32
    %2 = arith.cmpi ne, %1, %c0_i32_0 : i32
    scf.if %2 {
      %cst_50 = arith.constant 0.000000e+00 : f32
      %186 = vector.broadcast %cst_50 : f32 to vector<8x128xf32>
      %c0_51 = arith.constant 0 : index
      %c0_52 = arith.constant 0 : index
      %187 = vector.load %arg9[%c0_51, %c0_52] : memref<8x128xf32, #tpu.memory_space<vmem>>, vector<8x128xf32>
      tpu.vector_store %arg9[%c0_51, %c0_52], %186 {strides = array<i32>} : memref<8x128xf32, #tpu.memory_space<vmem>>, vector<8x128xf32>,
      %cst_53 = arith.constant 0.000000e+00 : f32
      %188 = vector.broadcast %cst_53 : f32 to vector<8x128xf32>
      %c0_54 = arith.constant 0 : index
      %c0_55 = arith.constant 0 : index
      %189 = vector.load %arg10[%c0_54, %c0_55] : memref<8x128xf32, #tpu.memory_space<vmem>>, vector<8x128xf32>
      tpu.vector_store %arg10[%c0_54, %c0_55], %188 {strides = array<i32>} : memref<8x128xf32, #tpu.memory_space<vmem>>, vector<8x128xf32>,
    } else {
    }
    %c0 = arith.constant 0 : index
    %c0_1 = arith.constant 0 : index
    %c0_2 = arith.constant 0 : index
    %3 = vector.load %arg2[%c0, %c0_1, %c0_2] : memref<1x32x32xbf16, #tpu.memory_space<vmem>>, vector<1x32x32xbf16>
    %4 = vector.shape_cast %3 : vector<1x32x32xbf16> to vector<32x32xbf16>
    %c0_3 = arith.constant 0 : index
    %c0_4 = arith.constant 0 : index
    %5 = vector.load %arg4[%c0_3, %c0_4] : memref<32x512xbf16, #tpu.memory_space<vmem>>, vector<32x512xbf16>
    %cst = arith.constant dense<0.000000e+00> : vector<32x512xf32>
    %6 = tpu.matmul %4, %5, %cst {dimension_numbers = #tpu.dot_dimension_numbers<[1], [0], [0], [1], [0, 0, 1, 1], [], []>} : vector<32x32xbf16>, vector<32x512xbf16>, vector<32x512xf32> -> vector<32x512xf32>
    %c0_5 = arith.constant 0 : index
    %c0_6 = arith.constant 0 : index
    %7 = vector.load %arg6[%c0_5, %c0_6] : memref<1x512xf32, #tpu.memory_space<vmem>>, vector<1x512xf32>
    %8 = vector.broadcast %7 : vector<1x512xf32> to vector<32x512xf32>
    %9 = arith.addf %6, %8 : vector<32x512xf32>
    %c0_7 = arith.constant 0 : index
    %c0_8 = arith.constant 0 : index
    %10 = vector.load %arg8[%c0_7, %c0_8] : memref<32x512xf32, #tpu.memory_space<vmem>>, vector<32x512xf32>
    tpu.vector_store %arg8[%c0_7, %c0_8], %9 {strides = array<i32>} : memref<32x512xf32, #tpu.memory_space<vmem>>, vector<32x512xf32>,
    %c0_9 = arith.constant 0 : index
    %c0_10 = arith.constant 0 : index
    %c0_11 = arith.constant 0 : index
    %11 = vector.load %arg3[%c0_9, %c0_10, %c0_11] : memref<1x8x1xi32, #tpu.memory_space<vmem>>, vector<1x8x1xi32>
    %12 = vector.shape_cast %11 : vector<1x8x1xi32> to vector<8x1xi32>
    %c0_12 = arith.constant 0 : index
    %c0_13 = arith.constant 0 : index
    %13 = vector.load %arg5[%c0_12, %c0_13] : memref<128x512xbf16, #tpu.memory_space<vmem>>, vector<128x512xbf16>
    %c4_i32 = arith.constant 4 : i32
    %14 = arith.muli %arg1, %c4_i32 : i32
    %c0_14 = arith.constant 0 : index
    %c0_15 = arith.constant 0 : index
    %15 = vector.load %arg9[%c0_14, %c0_15] : memref<8x128xf32, #tpu.memory_space<vmem>>, vector<8x128xf32>
    %c0_16 = arith.constant 0 : index
    %c0_17 = arith.constant 0 : index
    %16 = vector.load %arg10[%c0_16, %c0_17] : memref<8x128xf32, #tpu.memory_space<vmem>>, vector<8x128xf32>
    %c0_i32_18 = arith.constant 0 : i32
    %c8_i32 = arith.constant 8 : i32
    %17 = arith.muli %c0_i32_18, %c8_i32 : i32
    %18 = tpu.assume_multiple %17, 8 : i32
    %19 = arith.index_cast %18 : i32 to index
    %c0_19 = arith.constant 0 : index
    %20 = vector.load %arg8[%19, %c0_19] : memref<32x512xf32, #tpu.memory_space<vmem>>, vector<8x512xf32>
    %21 = arith.truncf %15 : vector<8x128xf32> to vector<8x128xbf16>
    %cst_20 = arith.constant dense<0.000000e+00> : vector<8x512xf32>
    %22 = tpu.matmul %21, %13, %cst_20 {dimension_numbers = #tpu.dot_dimension_numbers<[1], [0], [0], [1], [0, 0, 1, 1], [], []>} : vector<8x128xbf16>, vector<128x512xbf16>, vector<8x512xf32> -> vector<8x512xf32>
    %23 = arith.addf %20, %22 : vector<8x512xf32>
    %24 = vector.extract_strided_slice %23 {offsets = [0, 0], sizes = [8, 128], strides = [1, 1]} : vector<8x512xf32> to vector<8x128xf32>
    %25 = arith.negf %24 : vector<8x128xf32>
    %26 = math.exp %25 : vector<8x128xf32>
    %cst_21 = arith.constant 1.000000e+00 : f32
    %27 = vector.broadcast %cst_21 : f32 to vector<8x128xf32>
    %28 = arith.addf %27, %26 : vector<8x128xf32>
    %29 = arith.divf %27, %28 : vector<8x128xf32>
    %30 = vector.extract_strided_slice %23 {offsets = [0, 128], sizes = [8, 128], strides = [1, 1]} : vector<8x512xf32> to vector<8x128xf32>
    %31 = arith.negf %30 : vector<8x128xf32>
    %32 = math.exp %31 : vector<8x128xf32>
    %cst_22 = arith.constant 1.000000e+00 : f32
    %33 = vector.broadcast %cst_22 : f32 to vector<8x128xf32>
    %34 = arith.addf %33, %32 : vector<8x128xf32>
    %35 = arith.divf %33, %34 : vector<8x128xf32>
    %36 = vector.extract_strided_slice %23 {offsets = [0, 256], sizes = [8, 128], strides = [1, 1]} : vector<8x512xf32> to vector<8x128xf32>
    %37 = math.tanh %36 : vector<8x128xf32>
    %38 = vector.extract_strided_slice %23 {offsets = [0, 384], sizes = [8, 128], strides = [1, 1]} : vector<8x512xf32> to vector<8x128xf32>
    %39 = arith.negf %38 : vector<8x128xf32>
    %40 = math.exp %39 : vector<8x128xf32>
    %cst_23 = arith.constant 1.000000e+00 : f32
    %41 = vector.broadcast %cst_23 : f32 to vector<8x128xf32>
    %42 = arith.addf %41, %40 : vector<8x128xf32>
    %43 = arith.divf %41, %42 : vector<8x128xf32>
    %44 = arith.mulf %35, %16 : vector<8x128xf32>
    %45 = arith.mulf %29, %37 : vector<8x128xf32>
    %46 = arith.addf %44, %45 : vector<8x128xf32>
    %47 = math.tanh %46 : vector<8x128xf32>
    %48 = arith.mulf %43, %47 : vector<8x128xf32>
    %49 = arith.addi %14, %c0_i32_18 : i32
    %50 = vector.broadcast %49 : i32 to vector<8x1xi32>
    %51 = arith.cmpi slt, %50, %12 : vector<8x1xi32>
    %52 = vector.shape_cast %51 : vector<8x1xi1> to vector<8x1xi1>
    %53 = vector.broadcast %52 : vector<8x1xi1> to vector<8x128xi1>
    %54 = arith.select %53, %48, %15 : vector<8x128xi1>, vector<8x128xf32>
    %55 = vector.shape_cast %51 : vector<8x1xi1> to vector<8x1xi1>
    %56 = vector.broadcast %55 : vector<8x1xi1> to vector<8x128xi1>
    %57 = arith.select %56, %46, %16 : vector<8x128xi1>, vector<8x128xf32>
    %c1_i32 = arith.constant 1 : i32
    %c8_i32_24 = arith.constant 8 : i32
    %58 = arith.muli %c1_i32, %c8_i32_24 : i32
    %59 = tpu.assume_multiple %58, 8 : i32
    %60 = arith.index_cast %59 : i32 to index
    %c0_25 = arith.constant 0 : index
    %61 = vector.load %arg8[%60, %c0_25] : memref<32x512xf32, #tpu.memory_space<vmem>>, vector<8x512xf32>
    %62 = arith.truncf %54 : vector<8x128xf32> to vector<8x128xbf16>
    %cst_26 = arith.constant dense<0.000000e+00> : vector<8x512xf32>
    %63 = tpu.matmul %62, %13, %cst_26 {dimension_numbers = #tpu.dot_dimension_numbers<[1], [0], [0], [1], [0, 0, 1, 1], [], []>} : vector<8x128xbf16>, vector<128x512xbf16>, vector<8x512xf32> -> vector<8x512xf32>
    %64 = arith.addf %61, %63 : vector<8x512xf32>
    %65 = vector.extract_strided_slice %64 {offsets = [0, 0], sizes = [8, 128], strides = [1, 1]} : vector<8x512xf32> to vector<8x128xf32>
    %66 = arith.negf %65 : vector<8x128xf32>
    %67 = math.exp %66 : vector<8x128xf32>
    %cst_27 = arith.constant 1.000000e+00 : f32
    %68 = vector.broadcast %cst_27 : f32 to vector<8x128xf32>
    %69 = arith.addf %68, %67 : vector<8x128xf32>
    %70 = arith.divf %68, %69 : vector<8x128xf32>
    %71 = vector.extract_strided_slice %64 {offsets = [0, 128], sizes = [8, 128], strides = [1, 1]} : vector<8x512xf32> to vector<8x128xf32>
    %72 = arith.negf %71 : vector<8x128xf32>
    %73 = math.exp %72 : vector<8x128xf32>
    %cst_28 = arith.constant 1.000000e+00 : f32
    %74 = vector.broadcast %cst_28 : f32 to vector<8x128xf32>
    %75 = arith.addf %74, %73 : vector<8x128xf32>
    %76 = arith.divf %74, %75 : vector<8x128xf32>
    %77 = vector.extract_strided_slice %64 {offsets = [0, 256], sizes = [8, 128], strides = [1, 1]} : vector<8x512xf32> to vector<8x128xf32>
    %78 = math.tanh %77 : vector<8x128xf32>
    %79 = vector.extract_strided_slice %64 {offsets = [0, 384], sizes = [8, 128], strides = [1, 1]} : vector<8x512xf32> to vector<8x128xf32>
    %80 = arith.negf %79 : vector<8x128xf32>
    %81 = math.exp %80 : vector<8x128xf32>
    %cst_29 = arith.constant 1.000000e+00 : f32
    %82 = vector.broadcast %cst_29 : f32 to vector<8x128xf32>
    %83 = arith.addf %82, %81 : vector<8x128xf32>
    %84 = arith.divf %82, %83 : vector<8x128xf32>
    %85 = arith.mulf %76, %57 : vector<8x128xf32>
    %86 = arith.mulf %70, %78 : vector<8x128xf32>
    %87 = arith.addf %85, %86 : vector<8x128xf32>
    %88 = math.tanh %87 : vector<8x128xf32>
    %89 = arith.mulf %84, %88 : vector<8x128xf32>
    %90 = arith.addi %14, %c1_i32 : i32
    %91 = vector.broadcast %90 : i32 to vector<8x1xi32>
    %92 = arith.cmpi slt, %91, %12 : vector<8x1xi32>
    %93 = vector.shape_cast %92 : vector<8x1xi1> to vector<8x1xi1>
    %94 = vector.broadcast %93 : vector<8x1xi1> to vector<8x128xi1>
    %95 = arith.select %94, %89, %54 : vector<8x128xi1>, vector<8x128xf32>
    %96 = vector.shape_cast %92 : vector<8x1xi1> to vector<8x1xi1>
    %97 = vector.broadcast %96 : vector<8x1xi1> to vector<8x128xi1>
    %98 = arith.select %97, %87, %57 : vector<8x128xi1>, vector<8x128xf32>
    %c2_i32 = arith.constant 2 : i32
    %c8_i32_30 = arith.constant 8 : i32
    %99 = arith.muli %c2_i32, %c8_i32_30 : i32
    %100 = tpu.assume_multiple %99, 8 : i32
    %101 = arith.index_cast %100 : i32 to index
    %c0_31 = arith.constant 0 : index
    %102 = vector.load %arg8[%101, %c0_31] : memref<32x512xf32, #tpu.memory_space<vmem>>, vector<8x512xf32>
    %103 = arith.truncf %95 : vector<8x128xf32> to vector<8x128xbf16>
    %cst_32 = arith.constant dense<0.000000e+00> : vector<8x512xf32>
    %104 = tpu.matmul %103, %13, %cst_32 {dimension_numbers = #tpu.dot_dimension_numbers<[1], [0], [0], [1], [0, 0, 1, 1], [], []>} : vector<8x128xbf16>, vector<128x512xbf16>, vector<8x512xf32> -> vector<8x512xf32>
    %105 = arith.addf %102, %104 : vector<8x512xf32>
    %106 = vector.extract_strided_slice %105 {offsets = [0, 0], sizes = [8, 128], strides = [1, 1]} : vector<8x512xf32> to vector<8x128xf32>
    %107 = arith.negf %106 : vector<8x128xf32>
    %108 = math.exp %107 : vector<8x128xf32>
    %cst_33 = arith.constant 1.000000e+00 : f32
    %109 = vector.broadcast %cst_33 : f32 to vector<8x128xf32>
    %110 = arith.addf %109, %108 : vector<8x128xf32>
    %111 = arith.divf %109, %110 : vector<8x128xf32>
    %112 = vector.extract_strided_slice %105 {offsets = [0, 128], sizes = [8, 128], strides = [1, 1]} : vector<8x512xf32> to vector<8x128xf32>
    %113 = arith.negf %112 : vector<8x128xf32>
    %114 = math.exp %113 : vector<8x128xf32>
    %cst_34 = arith.constant 1.000000e+00 : f32
    %115 = vector.broadcast %cst_34 : f32 to vector<8x128xf32>
    %116 = arith.addf %115, %114 : vector<8x128xf32>
    %117 = arith.divf %115, %116 : vector<8x128xf32>
    %118 = vector.extract_strided_slice %105 {offsets = [0, 256], sizes = [8, 128], strides = [1, 1]} : vector<8x512xf32> to vector<8x128xf32>
    %119 = math.tanh %118 : vector<8x128xf32>
    %120 = vector.extract_strided_slice %105 {offsets = [0, 384], sizes = [8, 128], strides = [1, 1]} : vector<8x512xf32> to vector<8x128xf32>
    %121 = arith.negf %120 : vector<8x128xf32>
    %122 = math.exp %121 : vector<8x128xf32>
    %cst_35 = arith.constant 1.000000e+00 : f32
    %123 = vector.broadcast %cst_35 : f32 to vector<8x128xf32>
    %124 = arith.addf %123, %122 : vector<8x128xf32>
    %125 = arith.divf %123, %124 : vector<8x128xf32>
    %126 = arith.mulf %117, %98 : vector<8x128xf32>
    %127 = arith.mulf %111, %119 : vector<8x128xf32>
    %128 = arith.addf %126, %127 : vector<8x128xf32>
    %129 = math.tanh %128 : vector<8x128xf32>
    %130 = arith.mulf %125, %129 : vector<8x128xf32>
    %131 = arith.addi %14, %c2_i32 : i32
    %132 = vector.broadcast %131 : i32 to vector<8x1xi32>
    %133 = arith.cmpi slt, %132, %12 : vector<8x1xi32>
    %134 = vector.shape_cast %133 : vector<8x1xi1> to vector<8x1xi1>
    %135 = vector.broadcast %134 : vector<8x1xi1> to vector<8x128xi1>
    %136 = arith.select %135, %130, %95 : vector<8x128xi1>, vector<8x128xf32>
    %137 = vector.shape_cast %133 : vector<8x1xi1> to vector<8x1xi1>
    %138 = vector.broadcast %137 : vector<8x1xi1> to vector<8x128xi1>
    %139 = arith.select %138, %128, %98 : vector<8x128xi1>, vector<8x128xf32>
    %c3_i32 = arith.constant 3 : i32
    %c8_i32_36 = arith.constant 8 : i32
    %140 = arith.muli %c3_i32, %c8_i32_36 : i32
    %141 = tpu.assume_multiple %140, 8 : i32
    %142 = arith.index_cast %141 : i32 to index
    %c0_37 = arith.constant 0 : index
    %143 = vector.load %arg8[%142, %c0_37] : memref<32x512xf32, #tpu.memory_space<vmem>>, vector<8x512xf32>
    %144 = arith.truncf %136 : vector<8x128xf32> to vector<8x128xbf16>
    %cst_38 = arith.constant dense<0.000000e+00> : vector<8x512xf32>
    %145 = tpu.matmul %144, %13, %cst_38 {dimension_numbers = #tpu.dot_dimension_numbers<[1], [0], [0], [1], [0, 0, 1, 1], [], []>} : vector<8x128xbf16>, vector<128x512xbf16>, vector<8x512xf32> -> vector<8x512xf32>
    %146 = arith.addf %143, %145 : vector<8x512xf32>
    %147 = vector.extract_strided_slice %146 {offsets = [0, 0], sizes = [8, 128], strides = [1, 1]} : vector<8x512xf32> to vector<8x128xf32>
    %148 = arith.negf %147 : vector<8x128xf32>
    %149 = math.exp %148 : vector<8x128xf32>
    %cst_39 = arith.constant 1.000000e+00 : f32
    %150 = vector.broadcast %cst_39 : f32 to vector<8x128xf32>
    %151 = arith.addf %150, %149 : vector<8x128xf32>
    %152 = arith.divf %150, %151 : vector<8x128xf32>
    %153 = vector.extract_strided_slice %146 {offsets = [0, 128], sizes = [8, 128], strides = [1, 1]} : vector<8x512xf32> to vector<8x128xf32>
    %154 = arith.negf %153 : vector<8x128xf32>
    %155 = math.exp %154 : vector<8x128xf32>
    %cst_40 = arith.constant 1.000000e+00 : f32
    %156 = vector.broadcast %cst_40 : f32 to vector<8x128xf32>
    %157 = arith.addf %156, %155 : vector<8x128xf32>
    %158 = arith.divf %156, %157 : vector<8x128xf32>
    %159 = vector.extract_strided_slice %146 {offsets = [0, 256], sizes = [8, 128], strides = [1, 1]} : vector<8x512xf32> to vector<8x128xf32>
    %160 = math.tanh %159 : vector<8x128xf32>
    %161 = vector.extract_strided_slice %146 {offsets = [0, 384], sizes = [8, 128], strides = [1, 1]} : vector<8x512xf32> to vector<8x128xf32>
    %162 = arith.negf %161 : vector<8x128xf32>
    %163 = math.exp %162 : vector<8x128xf32>
    %cst_41 = arith.constant 1.000000e+00 : f32
    %164 = vector.broadcast %cst_41 : f32 to vector<8x128xf32>
    %165 = arith.addf %164, %163 : vector<8x128xf32>
    %166 = arith.divf %164, %165 : vector<8x128xf32>
    %167 = arith.mulf %158, %139 : vector<8x128xf32>
    %168 = arith.mulf %152, %160 : vector<8x128xf32>
    %169 = arith.addf %167, %168 : vector<8x128xf32>
    %170 = math.tanh %169 : vector<8x128xf32>
    %171 = arith.mulf %166, %170 : vector<8x128xf32>
    %172 = arith.addi %14, %c3_i32 : i32
    %173 = vector.broadcast %172 : i32 to vector<8x1xi32>
    %174 = arith.cmpi slt, %173, %12 : vector<8x1xi32>
    %175 = vector.shape_cast %174 : vector<8x1xi1> to vector<8x1xi1>
    %176 = vector.broadcast %175 : vector<8x1xi1> to vector<8x128xi1>
    %177 = arith.select %176, %171, %136 : vector<8x128xi1>, vector<8x128xf32>
    %178 = vector.shape_cast %174 : vector<8x1xi1> to vector<8x1xi1>
    %179 = vector.broadcast %178 : vector<8x1xi1> to vector<8x128xi1>
    %180 = arith.select %179, %169, %139 : vector<8x128xi1>, vector<8x128xf32>
    %c4_i32_42 = arith.constant 4 : i32
    %c0_43 = arith.constant 0 : index
    %c0_44 = arith.constant 0 : index
    %181 = vector.load %arg9[%c0_43, %c0_44] : memref<8x128xf32, #tpu.memory_space<vmem>>, vector<8x128xf32>
    tpu.vector_store %arg9[%c0_43, %c0_44], %177 {strides = array<i32>} : memref<8x128xf32, #tpu.memory_space<vmem>>, vector<8x128xf32>,
    %c0_45 = arith.constant 0 : index
    %c0_46 = arith.constant 0 : index
    %182 = vector.load %arg10[%c0_45, %c0_46] : memref<8x128xf32, #tpu.memory_space<vmem>>, vector<8x128xf32>
    tpu.vector_store %arg10[%c0_45, %c0_46], %180 {strides = array<i32>} : memref<8x128xf32, #tpu.memory_space<vmem>>, vector<8x128xf32>,
    %c0_47 = arith.constant 0 : index
    %c0_48 = arith.constant 0 : index
    %c0_49 = arith.constant 0 : index
    %183 = vector.load %arg7[%c0_47, %c0_48, %c0_49] : memref<1x8x128xf32, #tpu.memory_space<vmem>>, vector<1x8x128xf32>
    %184 = vector.shape_cast %183 : vector<1x8x128xf32> to vector<8x128xf32>
    %185 = vector.shape_cast %177 : vector<8x128xf32> to vector<1x8x128xf32>
    tpu.vector_store %arg7[%c0_47, %c0_48, %c0_49], %185 {strides = array<i32>} : memref<1x8x128xf32, #tpu.memory_space<vmem>>, vector<1x8x128xf32>,
    return
  }
  func.func @transform_0(%arg0: i32, %arg1: i32) -> (i32, i32, i32) {
    %c0_i32 = arith.constant 0 : i32
    %c0_i32_0 = arith.constant 0 : i32
    return %arg0, %arg1, %c0_i32 : i32, i32, i32
  }
  func.func @transform_1(%arg0: i32, %arg1: i32) -> (i32, i32, i32) {
    %c0_i32 = arith.constant 0 : i32
    %c0_i32_0 = arith.constant 0 : i32
    %c0_i32_1 = arith.constant 0 : i32
    return %arg0, %c0_i32, %c0_i32_0 : i32, i32, i32
  }
  func.func @transform_2(%arg0: i32, %arg1: i32) -> (i32, i32) {
    %c0_i32 = arith.constant 0 : i32
    %c0_i32_0 = arith.constant 0 : i32
    %c0_i32_1 = arith.constant 0 : i32
    return %c0_i32, %c0_i32_0 : i32, i32
  }
  func.func @transform_3(%arg0: i32, %arg1: i32) -> (i32, i32) {
    %c0_i32 = arith.constant 0 : i32
    %c0_i32_0 = arith.constant 0 : i32
    %c0_i32_1 = arith.constant 0 : i32
    return %c0_i32, %c0_i32_0 : i32, i32
  }
  func.func @transform_4(%arg0: i32, %arg1: i32) -> (i32, i32) {
    %c0_i32 = arith.constant 0 : i32
    %c0_i32_0 = arith.constant 0 : i32
    %c0_i32_1 = arith.constant 0 : i32
    return %c0_i32, %c0_i32_0 : i32, i32
  }
  func.func @transform_5(%arg0: i32, %arg1: i32) -> (i32, i32, i32) {
    %c0_i32 = arith.constant 0 : i32
    %c0_i32_0 = arith.constant 0 : i32
    %c0_i32_1 = arith.constant 0 : i32
    return %arg0, %c0_i32, %c0_i32_0 : i32, i32, i32
  }
}

</mosaic_0001>

<bundles_post_ra>
// kernel: neg.2
= control target key start
LH: loop header
LB: loop body
LE: loop exit
PB: predicated region body
PF: predicated region fallthrough
CT: control target
= control target key end

     0   :  { %s24_s0 = inlined_call_operand.vmem [shape: s32[4], index: 0, kind: input, shape index: {}]   ;;  %s25_s1 = inlined_call_operand.vmem [shape: s32[4], index: 1, kind: output, shape index: {}]  }
   0x1   :  { %v2_v0 = vld [vmem:[%s24_s0] sm:$0x1] }
   0x2   :  { %v5_v1 = vsub.s32 0, %v2_v0 }
   0x4   :  { %7 = vst [vmem:[%s25_s1] sm:$0x1] %v5_v1 }

// kernel: reverse
= control target key start
LH: loop header
LB: loop body
LE: loop exit
PB: predicated region body
PF: predicated region fallthrough
CT: control target
= control target key end

     0   :  { %v2_v0 = vlaneseq  ;;  %s123_s0 = inlined_call_operand.vmem [shape: f32[4], index: 0, kind: input, shape index: {}]   ;;  %s124_s1 = inlined_call_operand.vmem [shape: f32[4], index: 1, kind: output, shape index: {}]  }
   0x2   :  { %v3_v1 = vsub.s32 3, %v2_v0 }
   0x4   :  { %4 = vset.pattern.permute.xlu0 %v3_v1 }
   0x5   :  { %v43_v2 = vld [vmem:[#allocation1] sm:$0x1]  ;;  %v21_v3 = vld [vmem:[%s123_s0] sm:$0x1]  ;;  %v58_v10 = vshrl.u32 %v2_v0, 7 }
   0x6   :  { %44 = vst [vmem:[#allocation0] sm:$0x1] %v43_v2  ;;  %22 = vst [vmem:[#allocation1 + $0x1] sm:$0x1] %v21_v3 }
   0x7   :  { %vm59_vm0 = vcmp.lt.s32.totalorder %v58_v10, 1 }
   0xd   :  { %v46_v4 = vld [vmem:[#allocation0 + $0x7] ss:$-1 sm:$0xff]  ;;  %v40_v5 = vld [vmem:[#allocation1 + $0x1] sm:$0x1] }
   0xe   :  { %v47_v6 = vrot.slane %v46_v4, 7  ;;  %42 = vst [vmem:[#allocation0 + $0x8] sm:$0x1] %v40_v5 }
  0x10   :  { %48 = vperm.xlu0 %4, %v47_v6  }
  0x15   :  { %v53_v7 = vld [vmem:[#allocation0 + $0xf] ss:$-1 sm:$0xff] }
  0x16   :  { %v54_v8 = vrot.slane %v53_v7, 7 }
  0x18   :  { %55 = vperm.xlu0 %4, %v54_v8  }
  0x8f   :  { %v49_v9 = vpop.permute.xlu0 %48 }
  0x90   :  { %50 = vst [vmem:[#allocation2] sm:$0xff] %v49_v9 }
  0x97   :  { %v56_v11 = vpop.permute.xlu0 %55 }
  0x98   :  { %60 = vst.msk [vmem:[#allocation2] sm:$0xff] %vm59_vm0, %v56_v11 }
  0x9f   :  { %v64_v12 = vld [vmem:[#allocation2] sm:$0x1] }
  0xa0   :  { %66 = vst [vmem:[#allocation3] sm:$0x1] %v64_v12 }
  0xa7   :  { %v82_v13 = vld [vmem:[#allocation3] sm:$0x1] }
  0xa8   :  { %83 = vst [vmem:[%s124_s1] sm:$0x1] %v82_v13 }

// kernel: lstm_dual_enc_forward.1
= control target key start
LH: loop header
LB: loop body
LE: loop exit
PB: predicated region body
PF: predicated region fallthrough
CT: control target
= control target key end

     0   :  { %s1597_s18 = smov 0   ;;  %s1599_s19 = smov 0   ;;  %s2080_s0 = inlined_call_operand.vmem [shape: bf16[2,64,32], index: 0, kind: input, shape index: {}]   ;;  %s2081_s1 = inlined_call_operand.vmem [shape: s32[2,8,1], index: 1, kind: input, shape index: {}]   ;;  %s2082_s2 = inlined_call_operand.vmem [shape: bf16[32,512], index: 2, kind: input, shape index: {}]   ;;  %s2083_s3 = inlined_call_operand.vmem [shape: bf16[128,512], index: 3, kind: input, shape index: {}]   ;;  %s2084_s4 = inlined_call_operand.vmem [shape: f32[1,512], index: 4, kind: input, shape index: {}]   ;;  %s2085_s5 = inlined_call_operand.vmem [shape: f32[2,8,128], index: 5, kind: output, shape index: {}]  }
   0x1   :  { %s1601_s20 = smov 0   ;;  %s1603_s21 = smov 0  }
   0x2   :  { %s1605_s22 = smov 0  }
   0x3 LB: > { %s24_s23 = sadd.s32 1, %s1555_s20  ;;  %s27_s24 = sadd.s32 1, %s1559_s21  ;;  %s1563_s22 = sphi %s1605_s22, %s15_s22   ;;  %s1559_s21 = sphi %s1603_s21, %s2110_s21   ;;  %s1555_s20 = sphi %s1601_s20, %s2109_s20   ;;  %s1551_s19 = sphi %s1599_s19, %s2108_s19   ;;  %s1547_s18 = sphi %s1597_s18, %s2107_s18  }
   0x4   : > { %p25_p0 = scmp.ge.s32.totalorder %s24_s23, 2  ;;  %p1287_p1 = scmp.ge.s32.totalorder %s1563_s22, 1 }
   0x5   : > { %p215_p2 = scmp.lt.s32.totalorder %s1563_s22, 5 }
   0x6   : > { %s2112_s23 = smov (%p25_p0, %s24_s23), 0  ;;  %s2114_s24 = smov (!%p25_p0, %s27_s24), %s1559_s21 }
   0x7   : > { %p216_p3 = pnand %p1287_p1, %p215_p2  ;;  %p29_p4 = scmp.ge.s32.totalorder %s2114_s24, 2 }
   0x9   : > { %s2116_s24 = smov (%p29_p4, %s2114_s24), 0  ;;  %219 = sbr.rel (%p216_p3) target bundleno = 1113 (0x459), region = 40 }
  0x10   : > { %s1627_s25 = sshll.u32 %s1547_s18, 2  ;;  %p251_p5 = scmp.lt.s32.totalorder %s1551_s19, 1 }
  0x11   : > { %p253_p6 = scmp.lt.s32.totalorder %s1627_s25, 7  ;;  %p1293_p7 = scmp.ne.s32.totalorder %s1547_s18, 0 }
  0x12   : > { %s2118_s19 = smov (!%p251_p5, %s1551_s19), 1  ;;  %v1565_v0 = vmov (!%p1293_p7), 0.0  }
  0x13   : > { %s254_s26 = scalar_select %p253_p6, %s1627_s25, 7 }
  0x14   : > { %s1631_s27 = sshll.u32 %s2118_s19, 3  ;;  %272 = sbr.rel (%p1293_p7) target bundleno = 27 (0x1b), region = 44  ;;  %273 = vst [vmem:[#allocation3] sm:$0xff] (!%p1293_p7), %v1565_v0  ;;  %274 = vst [vmem:[#allocation4] sm:$0xff] (!%p1293_p7), %v1565_v0 }
  0x15   : > { %s256_s28 = sadd.s32 %s1631_s27, %s254_s26  ;;  %s263_s6 = scalar_lea.vmem %s2081_s1, %s1631_s27 }
  0x16   : > { %s1290_s7 = sshll.u32 %s256_s28, 2  ;;  %s267_s10 = scalar_lea.vmem %s2085_s5, %s1631_s27 }
  0x17   : > { %s1645_s13 = scalar_lea.vmem %s2080_s0, %s1290_s7 }
  0x1b PF: > { %v1399_v1 = vld [vmem:[%s2082_s2 + $0x4] ss:$16 sps:$4 sm:$0xff]   ;;  %v1401_v2 = vld [vmem:[%s2082_s2 + $0xc] ss:$16 sps:$4 sm:$0xff]   ;;  %v2086_v3 = vmov 0   ;;  %vm359_vm0 = vcmask 261120   ;;  %v802_v34 = vstv %s1627_s25  ;;  %v289_v51 = vlaneseq }
  0x1c   : > { %398 = vmatprep.mubr.bf16.mxu0 %v2086_v3  ;;  %451 = vmatprep.mubr.bf16.mxu1 %v2086_v3  ;;  %v1403_v4 = vld [vmem:[%s2082_s2] ss:$16 sps:$4 sm:$0xff]   ;;  %v1404_v5 = vld [vmem:[%s2082_s2 + $0x8] ss:$16 sps:$4 sm:$0xff]   ;;  %v1405_v6 = vld [vmem:[%s2082_s2 + $0x24] ss:$16 sps:$4 sm:$0xff]  }
  0x1d   : > { %366 = vmatprep.subr.bf16.mxu0 %v1399_v1  ;;  %1397 = vset.pattern.permute.xlu0 %v2086_v3  ;;  %v1407_v7 = vld [vmem:[%s2082_s2 + $0x2c] ss:$16 sps:$4 sm:$0xff]   ;;  %v1409_v8 = vld [vmem:[%s2082_s2 + $0x20] ss:$16 sps:$4 sm:$0xff]   ;;  %v1410_v9 = vld [vmem:[%s2082_s2 + $0x28] ss:$16 sps:$4 sm:$0xff]  }
  0x1e   : > { %419 = vmatprep.subr.bf16.mxu1 %v1401_v2  ;;  %1398 = vset.pattern.permute.xlu1 %v2086_v3  ;;  %v1411_v10 = vld [vmem:[%s1645_s13] sm:$0xff]   ;;  %v1684_v12 = vld [vmem:[%s2083_s3 + $0xc] ss:$16 sps:$4 sm:$0xff]   ;;  %v1694_v14 = vld [vmem:[%s2083_s3 + $0x8] ss:$16 sps:$4 sm:$0xff]   ;;  %s929_s12 = sadd.s32 1, %s1627_s25 }
  0x1f   : > { %367 = vmatpush1.bf16.msra.mxu0 %v1403_v4  ;;  %420 = vmatpush1.bf16.msra.mxu1 %v1404_v5  ;;  %v1679_v11 = vld [vmem:[%s2083_s3 + $0x4] ss:$16 sps:$4 sm:$0xff]   ;;  %v1689_v13 = vld [vmem:[%s2083_s3] ss:$16 sps:$4 sm:$0xff]   ;;  %v1706_v16 = vld [vmem:[%s2083_s3 + $0x2c] ss:$16 sps:$4 sm:$0xff]   ;;  %v930_v40 = vstv %s929_s12 }
  0x20   : > { %368 = vmatprep.subr.bf16.mxu0 %v1405_v6  ;;  %421 = vmatprep.subr.bf16.mxu1 %v1407_v7  ;;  %v1700_v15 = vld [vmem:[%s2083_s3 + $0x24] ss:$16 sps:$4 sm:$0xff]   ;;  %v1713_v17 = vld [vmem:[%s2083_s3 + $0x20] ss:$16 sps:$4 sm:$0xff]   ;;  %v1720_v18 = vld [vmem:[%s2083_s3 + $0x28] ss:$16 sps:$4 sm:$0xff]  }
  0x21   : > { %v1727_v19 = vld [vmem:[%s2083_s3 + $0x44] ss:$16 sps:$4 sm:$0xff]   ;;  %v1732_v20 = vld [vmem:[%s2083_s3 + $0x4c] ss:$16 sps:$4 sm:$0xff]   ;;  %v1741_v21 = vld [vmem:[%s2083_s3 + $0x40] ss:$16 sps:$4 sm:$0xff]  }
  0x22   : > { %v1746_v22 = vld [vmem:[%s2083_s3 + $0x48] ss:$16 sps:$4 sm:$0xff]   ;;  %v1751_v23 = vld [vmem:[%s2083_s3 + $0x64] ss:$16 sps:$4 sm:$0xff]   ;;  %v1758_v24 = vld [vmem:[%s2083_s3 + $0x6c] ss:$16 sps:$4 sm:$0xff]  }
  0x23   : > { %369 = vmatpush1.bf16.msra.mxu0 %v1409_v8  ;;  %422 = vmatpush1.bf16.msra.mxu1 %v1410_v9  ;;  %v1763_v25 = vld [vmem:[%s2083_s3 + $0x60] ss:$16 sps:$4 sm:$0xff]   ;;  %v1768_v26 = vld [vmem:[%s2083_s3 + $0x68] ss:$16 sps:$4 sm:$0xff]   ;;  %v1775_v27 = vld [vmem:[%s2083_s3 + $0x84] ss:$16 sps:$4 sm:$0xff]  }
  0x24   : > { %692 = vmatprep.subr.bf16.mxu0 %v1679_v11  ;;  %733 = vmatprep.subr.bf16.mxu1 %v1684_v12  ;;  %v1782_v28 = vld [vmem:[%s2083_s3 + $0x8c] ss:$16 sps:$4 sm:$0xff]   ;;  %v1788_v30 = vld [vmem:[%s2083_s3 + $0x80] ss:$16 sps:$4 sm:$0xff]   ;;  %v1795_v31 = vld [vmem:[%s2083_s3 + $0x88] ss:$16 sps:$4 sm:$0xff]  }
  0x25   : > { %v1446_v29 = vld [vmem:[%s1645_s13 + $0x8] sm:$0xff]   ;;  %v1802_v32 = vld [vmem:[%s2083_s3 + $0xa4] ss:$16 sps:$4 sm:$0xff]   ;;  %v1820_v35 = vld [vmem:[%s2083_s3 + $0xa0] ss:$16 sps:$4 sm:$0xff]   ;;  %v290_v52 = vshrl.u32 %v289_v51, 7 }
  0x26   : > { %1304 = vmatmul.mubr.msk.bf16.vlgmr.msra.gmra.mrb[0].mxu0 %vm359_vm0, %v1411_v10  ;;  %1306 = vmatmul.mubr.msk.bf16.vlgmr.msra.gmra.mrb[0].mxu1 %vm359_vm0, %v1411_v10  ;;  %v1807_v33 = vld [vmem:[%s2083_s3 + $0xac] ss:$16 sps:$4 sm:$0xff]   ;;  %v1825_v36 = vld [vmem:[%s2083_s3 + $0xa8] ss:$16 sps:$4 sm:$0xff]   ;;  %v1832_v37 = vld [vmem:[%s2083_s3 + $0xc4] ss:$16 sps:$4 sm:$0xff]  }
  0x27   : > { %693 = vmatpush1.bf16.msra.mxu0 %v1689_v13  ;;  %734 = vmatpush1.bf16.msra.mxu1 %v1694_v14  ;;  %v1837_v38 = vld [vmem:[%s2083_s3 + $0xcc] ss:$16 sps:$4 sm:$0xff]   ;;  %v1844_v39 = vld [vmem:[%s263_s6] sm:$0xff]  ;;  %v1858_v43 = vld [vmem:[%s2083_s3 + $0xc8] ss:$16 sps:$4 sm:$0xff]   ;;  %v291_v53 = vsub.s32 0, %v290_v52 }
  0x28   : > { %694 = vmatprep.subr.bf16.mxu0 %v1700_v15  ;;  %735 = vmatprep.subr.bf16.mxu1 %v1706_v16  ;;  %vm803_vm1 = vcmp.lt.s32.totalorder %v802_v34, %v1844_v39  ;;  %v1853_v42 = vld [vmem:[%s2083_s3 + $0xc0] ss:$16 sps:$4 sm:$0xff]   ;;  %vm931_vm2 = vcmp.lt.s32.totalorder %v930_v40, %v1844_v39  ;;  %v1866_v44 = vld [vmem:[%s2083_s3 + $0xe4] ss:$16 sps:$4 sm:$0xff]   ;;  %v1871_v45 = vld [vmem:[%s2083_s3 + $0xec] ss:$16 sps:$4 sm:$0xff]  }
  0x29   : > { %408 = vmatprep.mubr.bf16.mxu0 %v2086_v3  ;;  %461 = vmatprep.mubr.bf16.mxu1 %v2086_v3  ;;  %v804_v41 = vsel %vm803_vm1, 1, %v2086_v3  ;;  %v932_v46 = vsel %vm931_vm2, 1, %v2086_v3  ;;  %v1879_v47 = vld [vmem:[%s2083_s3 + $0xe0] ss:$16 sps:$4 sm:$0xff]   ;;  %v1884_v48 = vld [vmem:[%s2083_s3 + $0xe8] ss:$16 sps:$4 sm:$0xff]  }
  0x2a   : > { %806 = vperm.xlu0 %1397, %v804_v41   ;;  %v1886_v49 = vld [vmem:[#allocation3] sm:$0xff]  ;;  %v299_v54 = vsub.s32 2, %v290_v52  ;;  %v303_v56 = vsub.s32 3, %v290_v52  ;;  %v295_v57 = vsub.s32 1, %v290_v52  ;;  %s1057_s28 = sadd.s32 2, %s1627_s25  ;;  %s1185_s29 = sadd.s32 3, %s1627_s25 }
  0x2b   : > { %695 = vmatpush1.bf16.msra.mxu0 %v1713_v17  ;;  %736 = vmatpush1.bf16.msra.mxu1 %v1720_v18  ;;  %v531_v50 = vpack.c.bf16 %v1886_v49, %v1886_v49  ;;  %v287_v55 = vld [vmem:[%s2084_s4] sm:$0xf] }
  0x2c   : > { %696 = vmatprep.subr.bf16.mxu0 %v1727_v19  ;;  %737 = vmatprep.subr.bf16.mxu1 %v1732_v20  ;;  %v292_v58 = vrot.slane %v287_v55, %v291_v53  ;;  %v300_v59 = vrot.slane %v287_v55, %v299_v54  ;;  %v304_v62 = vrot.slane %v287_v55, %v303_v56 }
  0x2d   : > { %v296_v1 = vrot.slane %v287_v55, %v295_v57 }
  0x2e   : > { %1305 = vmatmul.mubr.msk.bf16.gmra.mrb[4].mxu0 %vm359_vm0, %v1446_v29  ;;  %1307 = vmatmul.mubr.msk.bf16.gmra.mrb[4].mxu1 %vm359_vm0, %v1446_v29 }
  0x2f   : > { %697 = vmatpush1.bf16.msra.mxu0 %v1741_v21  ;;  %738 = vmatpush1.bf16.msra.mxu1 %v1746_v22 }
  0x30   : > { %698 = vmatprep.subr.bf16.mxu0 %v1751_v23  ;;  %739 = vmatprep.subr.bf16.mxu1 %v1758_v24 }
  0x31   : > { %724 = vmatprep.mubr.bf16.mxu0 %v2086_v3  ;;  %765 = vmatprep.mubr.bf16.mxu1 %v2086_v3 }
  0x32   : > { %934 = vperm.xlu0 %1397, %v932_v46  }
  0x33   : > { %699 = vmatpush1.bf16.msra.mxu0 %v1763_v25  ;;  %740 = vmatpush1.bf16.msra.mxu1 %v1768_v26 }
  0x34   : > { %700 = vmatprep.subr.bf16.mxu0 %v1775_v27  ;;  %741 = vmatprep.subr.bf16.mxu1 %v1782_v28 }
  0x37   : > { %701 = vmatpush1.bf16.msra.mxu0 %v1788_v30  ;;  %742 = vmatpush1.bf16.msra.mxu1 %v1795_v31 }
  0x38   : > { %702 = vmatprep.subr.bf16.mxu0 %v1802_v32  ;;  %743 = vmatprep.subr.bf16.mxu1 %v1807_v33 }
  0x3b   : > { %703 = vmatpush1.bf16.msra.mxu0 %v1820_v35  ;;  %744 = vmatpush1.bf16.msra.mxu1 %v1825_v36 }
  0x3c   : > { %704 = vmatprep.subr.bf16.mxu0 %v1832_v37  ;;  %745 = vmatprep.subr.bf16.mxu1 %v1837_v38 }
  0x3f   : > { %705 = vmatpush1.bf16.msra.mxu0 %v1853_v42  ;;  %746 = vmatpush1.bf16.msra.mxu1 %v1858_v43 }
  0x40   : > { %706 = vmatprep.subr.bf16.mxu0 %v1866_v44  ;;  %747 = vmatprep.subr.bf16.mxu1 %v1871_v45 }
  0x43   : > { %707 = vmatpush1.bf16.msra.mxu0 %v1879_v47  ;;  %748 = vmatpush1.bf16.msra.mxu1 %v1884_v48 }
  0x44   : > { %819 = vmatprep.subr.bf16.mxu0 %v1679_v11  ;;  %860 = vmatprep.subr.bf16.mxu1 %v1684_v12 }
  0x46   : > { %725 = vmatmul.mubr.bf16.vlgmr.msra.gmra.mrb[8].mxu0 %v531_v50  ;;  %766 = vmatmul.mubr.bf16.vlgmr.msra.gmra.mrb[8].mxu1 %v531_v50 }
  0x47   : > { %820 = vmatpush1.bf16.msra.mxu0 %v1689_v13  ;;  %861 = vmatpush1.bf16.msra.mxu1 %v1694_v14 }
  0x48   : > { %821 = vmatprep.subr.bf16.mxu0 %v1700_v15  ;;  %862 = vmatprep.subr.bf16.mxu1 %v1706_v16 }
  0x49   : > { %851 = vmatprep.mubr.bf16.mxu0 %v2086_v3  ;;  %892 = vmatprep.mubr.bf16.mxu1 %v2086_v3 }
  0x4b   : > { %822 = vmatpush1.bf16.msra.mxu0 %v1713_v17  ;;  %863 = vmatpush1.bf16.msra.mxu1 %v1720_v18 }
  0x4c   : > { %823 = vmatprep.subr.bf16.mxu0 %v1727_v19  ;;  %864 = vmatprep.subr.bf16.mxu1 %v1732_v20 }
  0x4f   : > { %824 = vmatpush1.bf16.msra.mxu0 %v1741_v21  ;;  %865 = vmatpush1.bf16.msra.mxu1 %v1746_v22 }
  0x50   : > { %825 = vmatprep.subr.bf16.mxu0 %v1751_v23  ;;  %866 = vmatprep.subr.bf16.mxu1 %v1758_v24 }
  0x53   : > { %826 = vmatpush1.bf16.msra.mxu0 %v1763_v25  ;;  %867 = vmatpush1.bf16.msra.mxu1 %v1768_v26 }
  0x54   : > { %827 = vmatprep.subr.bf16.mxu0 %v1775_v27  ;;  %868 = vmatprep.subr.bf16.mxu1 %v1782_v28 }
  0x57   : > { %828 = vmatpush1.bf16.msra.mxu0 %v1788_v30  ;;  %869 = vmatpush1.bf16.msra.mxu1 %v1795_v31 }
  0x58   : > { %829 = vmatprep.subr.bf16.mxu0 %v1802_v32  ;;  %870 = vmatprep.subr.bf16.mxu1 %v1807_v33 }
  0x5b   : > { %830 = vmatpush1.bf16.msra.mxu0 %v1820_v35  ;;  %871 = vmatpush1.bf16.msra.mxu1 %v1825_v36 }
  0x5c   : > { %831 = vmatprep.subr.bf16.mxu0 %v1832_v37  ;;  %872 = vmatprep.subr.bf16.mxu1 %v1837_v38 }
  0x5f   : > { %832 = vmatpush1.bf16.msra.mxu0 %v1853_v42  ;;  %873 = vmatpush1.bf16.msra.mxu1 %v1858_v43 }
  0x60   : > { %833 = vmatprep.subr.bf16.mxu0 %v1866_v44  ;;  %874 = vmatprep.subr.bf16.mxu1 %v1871_v45 }
  0x63   : > { %834 = vmatpush1.bf16.msra.mxu0 %v1879_v47  ;;  %875 = vmatpush1.bf16.msra.mxu1 %v1884_v48 }
  0x64   : > { %947 = vmatprep.subr.bf16.mxu0 %v1679_v11  ;;  %988 = vmatprep.subr.bf16.mxu1 %v1684_v12 }
  0xf9   : > { %v400_v60 = vpop.f32.mrb[0].mxu0  ;;  %v453_v61 = vpop.f32.mrb[0].mxu1 }
  0xfa   : > { %v402_v63 = vpop.f32.mrb[1].mxu0  ;;  %v455_v0 = vpop.f32.mrb[1].mxu1 }
  0xfb   : > { %v404_v2 = vpop.f32.mrb[2].mxu0  ;;  %v457_v4 = vpop.f32.mrb[2].mxu1  ;;  %v456_v3 = vadd.f32 %v455_v0, %v304_v62 }
  0xfc   : > { %v1933_v5 = vadd.f32 %v404_v2, %v292_v58  ;;  %v406_v6 = vpop.f32.mrb[3].mxu0  ;;  %v1935_v7 = vadd.f32 %v457_v4, %v300_v59  ;;  %v459_v8 = vpop.f32.mrb[3].mxu1 }
  0xfd   : > { %v1937_v9 = vadd.f32 %v406_v6, %v296_v1  ;;  %v1939_v10 = vadd.f32 %v459_v8, %v304_v62  ;;  %v401_v8 = vadd.f32 %v400_v60, %v292_v58 }
  0xff   : > { %2088 = vst [vmem:[#allocation5_spill] sm:$0xff] %v1937_v9  ;;  %2089 = vst [vmem:[#allocation6_spill] sm:$0xff] %v1939_v10 }
 0x101   : > { %v410_v29 = vpop.f32.mrb[4].mxu0  ;;  %v463_v34 = vpop.f32.mrb[4].mxu1 }
 0x102   : > { %v1941_v40 = vadd.f32 %v410_v29, %v292_v58  ;;  %v412_v41 = vpop.f32.mrb[5].mxu0  ;;  %v1943_v46 = vadd.f32 %v463_v34, %v300_v59  ;;  %v465_v50 = vpop.f32.mrb[5].mxu1  ;;  %v454_v29 = vadd.f32 %v453_v61, %v300_v59  ;;  %v403_v34 = vadd.f32 %v402_v63, %v296_v1 }
 0x103   : > { %v1945_v51 = vadd.f32 %v412_v41, %v296_v1  ;;  %v414_v52 = vpop.f32.mrb[6].mxu0  ;;  %v1947_v53 = vadd.f32 %v465_v50, %v304_v62  ;;  %v467_v54 = vpop.f32.mrb[6].mxu1 }
 0x104   : > { %2090 = vst [vmem:[#allocation7_spill] sm:$0xff] %v1941_v40  ;;  %2091 = vst [vmem:[#allocation8_spill] sm:$0xff] %v1943_v46  ;;  %v1949_v55 = vadd.f32 %v414_v52, %v292_v58  ;;  %v416_v56 = vpop.f32.mrb[7].mxu0  ;;  %v1951_v57 = vadd.f32 %v467_v54, %v300_v59  ;;  %v469_v2 = vpop.f32.mrb[7].mxu1 }
 0x105   : > { %2092 = vst [vmem:[#allocation9_spill] sm:$0xff] %v1945_v51  ;;  %2093 = vst [vmem:[#allocation10_spill] sm:$0xff] %v1947_v53  ;;  %v1953_v4 = vadd.f32 %v416_v56, %v296_v1  ;;  %v1955_v6 = vadd.f32 %v469_v2, %v304_v62 }
 0x106   : > { %2094 = vst [vmem:[#allocation11_spill] sm:$0xff] %v1949_v55  ;;  %2095 = vst [vmem:[#allocation12_spill] sm:$0xff] %v1951_v57 }
 0x107   : > { %2096 = vst [vmem:[#allocation13_spill] sm:$0xff] %v1953_v4 }
 0x119   : > { %v726_v41 = vpop.f32.mrb[8].mxu0  ;;  %v767_v51 = vpop.f32.mrb[8].mxu1 }
 0x11a   : > { %v774_v46 = vadd.f32 %v726_v41, %v401_v8  ;;  %v776_v50 = vadd.f32 %v767_v51, %v454_v29  ;;  %v728_v53 = vpop.f32.mrb[9].mxu0  ;;  %v769_v40 = vpop.f32.mrb[9].mxu1  ;;  %v1186_v41 = vstv %s1185_s29 }
 0x11b   : > { %v775_v52 = vadd.f32 %v728_v53, %v403_v34  ;;  %v777_v55 = vadd.f32 %v769_v40, %v456_v3  ;;  %v730_v10 = vpop.f32.mrb[10].mxu0  ;;  %v771_v54 = vpop.f32.mrb[10].mxu1  ;;  %v523_v3 = vld [vmem:[#allocation4] sm:$0xff]  ;;  %v2097_v34 = vmov 0   ;;  %vm1187_vm5 = vcmp.lt.s32.totalorder %v1186_v41, %v1844_v39 }
 0x11c   : > { %v1341_v57 = vmul.f32 -1.442695, %v774_v46  ;;  %v731_v9 = vpop.f32.mrb[11].mxu0  ;;  %v772_v56 = vpop.f32.mrb[11].mxu1 }
 0x11d   : > { %v1342_v4 = vmul.f32 -1.442695, %v775_v52  ;;  %v1343_v58 = vmul.f32 -1.442695, %v777_v55  ;;  %v807_v10 = vpop.permute.xlu0 %806  ;;  %v1188_v52 = vsel %vm1187_vm5, 1, %v2097_v34 }
 0x11e   : > { %1461 = vpow2.f32 %v1341_v57  ;;  %vm808_vm3 = vcmp.eq.s32.totalorder %v807_v10, 1 }
 0x11f   : > { %1463 = vpow2.f32 %v1342_v4 }
 0x120   : > { %1465 = vpow2.f32 %v1343_v58 }
 0x121   : > { %1467 = vtanh.f32 %v776_v50  ;;  %v935_v41 = vpop.permute.xlu0 %934 }
 0x122   : > { %vm936_vm6 = vcmp.eq.s32.totalorder %v935_v41, 1 }
 0x128   : > { %v1462_v59 = vpop.eup %1461 }
 0x129   : > { %v1464_v60 = vpop.eup %1463  ;;  %v781_v61 = vadd.f32 1.0, %v1462_v59 }
 0x12a   : > { %v787_v62 = vadd.f32 1.0, %v1464_v60  ;;  %v1466_v63 = vpop.eup %1465  ;;  %v2098_v60 = vld [vmem:[#allocation5_spill] sm:$0xff] }
 0x12b   : > { %1469 = vrcp.f32 %v781_v61  ;;  %v1468_v0 = vpop.eup %1467  ;;  %v794_v9 = vadd.f32 1.0, %v1466_v63 }
 0x12c   : > { %1471 = vrcp.f32 %v787_v62  ;;  %v2099_v62 = vld [vmem:[#allocation6_spill] sm:$0xff] }
 0x12d   : > { %1473 = vrcp.f32 %v794_v9 }
 0x135   : > { %v1470_v1 = vpop.eup %1469 }
 0x136   : > { %v1472_v40 = vpop.eup %1471  ;;  %v798_v46 = vmul.f32 %v1470_v1, %v1468_v0 }
 0x137   : > { %v797_v51 = vmul.f32 %v1472_v40, %v523_v3  ;;  %v1474_v57 = vpop.eup %1473 }
 0x139   : > { %v799_v53 = vadd.f32 %v798_v46, %v797_v51 }
 0x13b   : > { %1475 = vtanh.f32 %v799_v53  ;;  %v1957_v55 = vsel %vm808_vm3, %v799_v53, %v523_v3 }
 0x145   : > { %v1476_v2 = vpop.eup %1475 }
 0x146   : > { %v801_v4 = vmul.f32 %v1476_v2, %v1474_v57 }
 0x148   : > { %v1960_v8 = vsel %vm808_vm3, %v801_v4, %v1886_v49  ;;  %v1058_v49 = vstv %s1057_s28 }
 0x149   : > { %v818_v29 = vpack.c.bf16 %v1960_v8, %v1960_v8  ;;  %vm1059_vm4 = vcmp.lt.s32.totalorder %v1058_v49, %v1844_v39 }
 0x14a   : > { %v1060_v50 = vsel %vm1059_vm4, 1, %v2097_v34 }
 0x14b   : > { %852 = vmatmul.mubr.bf16.vlgmr.msra.gmra.mrb[12].mxu0 %v818_v29  ;;  %893 = vmatmul.mubr.bf16.vlgmr.msra.gmra.mrb[12].mxu1 %v818_v29 }
 0x14c   : > { %948 = vmatpush1.bf16.msra.mxu0 %v1689_v13  ;;  %989 = vmatpush1.bf16.msra.mxu1 %v1694_v14 }
 0x14d   : > { %949 = vmatprep.subr.bf16.mxu0 %v1700_v15  ;;  %990 = vmatprep.subr.bf16.mxu1 %v1706_v16 }
 0x14e   : > { %979 = vmatprep.mubr.bf16.mxu0 %v2097_v34  ;;  %1020 = vmatprep.mubr.bf16.mxu1 %v2097_v34 }
 0x14f   : > { %1062 = vperm.xlu1 %1398, %v1060_v50  }
 0x150   : > { %950 = vmatpush1.bf16.msra.mxu0 %v1713_v17  ;;  %991 = vmatpush1.bf16.msra.mxu1 %v1720_v18 }
 0x151   : > { %951 = vmatprep.subr.bf16.mxu0 %v1727_v19  ;;  %992 = vmatprep.subr.bf16.mxu1 %v1732_v20 }
 0x153   : > { %1190 = vperm.xlu1 %1398, %v1188_v52  }
 0x154   : > { %952 = vmatpush1.bf16.msra.mxu0 %v1741_v21  ;;  %993 = vmatpush1.bf16.msra.mxu1 %v1746_v22 }
 0x155   : > { %953 = vmatprep.subr.bf16.mxu0 %v1751_v23  ;;  %994 = vmatprep.subr.bf16.mxu1 %v1758_v24 }
 0x158   : > { %954 = vmatpush1.bf16.msra.mxu0 %v1763_v25  ;;  %995 = vmatpush1.bf16.msra.mxu1 %v1768_v26 }
 0x159   : > { %955 = vmatprep.subr.bf16.mxu0 %v1775_v27  ;;  %996 = vmatprep.subr.bf16.mxu1 %v1782_v28 }
 0x15c   : > { %956 = vmatpush1.bf16.msra.mxu0 %v1788_v30  ;;  %997 = vmatpush1.bf16.msra.mxu1 %v1795_v31 }
 0x15d   : > { %957 = vmatprep.subr.bf16.mxu0 %v1802_v32  ;;  %998 = vmatprep.subr.bf16.mxu1 %v1807_v33 }
 0x160   : > { %958 = vmatpush1.bf16.msra.mxu0 %v1820_v35  ;;  %999 = vmatpush1.bf16.msra.mxu1 %v1825_v36 }
 0x161   : > { %959 = vmatprep.subr.bf16.mxu0 %v1832_v37  ;;  %1000 = vmatprep.subr.bf16.mxu1 %v1837_v38 }
 0x164   : > { %960 = vmatpush1.bf16.msra.mxu0 %v1853_v42  ;;  %1001 = vmatpush1.bf16.msra.mxu1 %v1858_v43 }
 0x165   : > { %961 = vmatprep.subr.bf16.mxu0 %v1866_v44  ;;  %1002 = vmatprep.subr.bf16.mxu1 %v1871_v45 }
 0x168   : > { %962 = vmatpush1.bf16.msra.mxu0 %v1879_v47  ;;  %1003 = vmatpush1.bf16.msra.mxu1 %v1884_v48 }
 0x169   : > { %1075 = vmatprep.subr.bf16.mxu0 %v1679_v11  ;;  %1116 = vmatprep.subr.bf16.mxu1 %v1684_v12 }
 0x21e   : > { %v853_v54 = vpop.f32.mrb[12].mxu0  ;;  %v894_v56 = vpop.f32.mrb[12].mxu1 }
 0x21f   : > { %v901_v11 = vadd.f32 %v853_v54, %v1933_v5  ;;  %v903_v12 = vadd.f32 %v894_v56, %v1935_v7  ;;  %v855_v58 = vpop.f32.mrb[13].mxu0  ;;  %v896_v59 = vpop.f32.mrb[13].mxu1 }
 0x220   : > { %v902_v61 = vadd.f32 %v855_v58, %v2098_v60  ;;  %v904_v63 = vadd.f32 %v896_v59, %v2099_v62  ;;  %v857_v0 = vpop.f32.mrb[14].mxu0  ;;  %v898_v39 = vpop.f32.mrb[14].mxu1 }
 0x221   : > { %v1344_v3 = vmul.f32 -1.442695, %v901_v11  ;;  %v858_v1 = vpop.f32.mrb[15].mxu0  ;;  %v899_v10 = vpop.f32.mrb[15].mxu1 }
 0x222   : > { %v1345_v40 = vmul.f32 -1.442695, %v902_v61  ;;  %v1346_v9 = vmul.f32 -1.442695, %v904_v63  ;;  %v2104_v1 = vld [vmem:[#allocation11_spill] sm:$0xff] }
 0x223   : > { %1477 = vpow2.f32 %v1344_v3 }
 0x224   : > { %1479 = vpow2.f32 %v1345_v40  ;;  %v2105_v40 = vld [vmem:[#allocation12_spill] sm:$0xff] }
 0x225   : > { %1481 = vpow2.f32 %v1346_v9 }
 0x226   : > { %1483 = vtanh.f32 %v903_v12 }
 0x22d   : > { %v1478_v46 = vpop.eup %1477 }
 0x22e   : > { %v1480_v51 = vpop.eup %1479  ;;  %v908_v5 = vadd.f32 1.0, %v1478_v46 }
 0x22f   : > { %v914_v7 = vadd.f32 1.0, %v1480_v51  ;;  %v1482_v53 = vpop.eup %1481 }
 0x230   : > { %1485 = vrcp.f32 %v908_v5  ;;  %v1484_v57 = vpop.eup %1483  ;;  %v921_v49 = vadd.f32 1.0, %v1482_v53  ;;  %v2106_v5 = vld [vmem:[#allocation13_spill] sm:$0xff] }
 0x231   : > { %1487 = vrcp.f32 %v914_v7 }
 0x232   : > { %1489 = vrcp.f32 %v921_v49 }
 0x23a   : > { %v1486_v2 = vpop.eup %1485 }
 0x23b   : > { %v1488_v4 = vpop.eup %1487  ;;  %v925_v29 = vmul.f32 %v1486_v2, %v1484_v57 }
 0x23c   : > { %v924_v50 = vmul.f32 %v1488_v4, %v1957_v55  ;;  %v1490_v56 = vpop.eup %1489 }
 0x23e   : > { %v926_v52 = vadd.f32 %v925_v29, %v924_v50 }
 0x240   : > { %1491 = vtanh.f32 %v926_v52  ;;  %v2010_v54 = vsel %vm936_vm6, %v926_v52, %v1957_v55 }
 0x24a   : > { %v1492_v11 = vpop.eup %1491 }
 0x24b   : > { %v928_v12 = vmul.f32 %v1492_v11, %v1490_v56 }
 0x24d   : > { %v2013_v58 = vsel %vm936_vm6, %v928_v12, %v1960_v8 }
 0x24e   : > { %v946_v59 = vpack.c.bf16 %v2013_v58, %v2013_v58 }
 0x250   : > { %980 = vmatmul.mubr.bf16.vlgmr.msra.gmra.mrb[16].mxu0 %v946_v59  ;;  %1021 = vmatmul.mubr.bf16.vlgmr.msra.gmra.mrb[16].mxu1 %v946_v59 }
 0x251   : > { %1076 = vmatpush1.bf16.msra.mxu0 %v1689_v13  ;;  %1117 = vmatpush1.bf16.msra.mxu1 %v1694_v14 }
 0x252   : > { %1077 = vmatprep.subr.bf16.mxu0 %v1700_v15  ;;  %1118 = vmatprep.subr.bf16.mxu1 %v1706_v16  ;;  %v2100_v15 = vld [vmem:[#allocation7_spill] sm:$0xff] }
 0x253   : > { %1107 = vmatprep.mubr.bf16.mxu0 %v2097_v34  ;;  %1148 = vmatprep.mubr.bf16.mxu1 %v2097_v34 }
 0x255   : > { %1078 = vmatpush1.bf16.msra.mxu0 %v1713_v17  ;;  %1119 = vmatpush1.bf16.msra.mxu1 %v1720_v18  ;;  %v2101_v17 = vld [vmem:[#allocation8_spill] sm:$0xff] }
 0x256   : > { %1079 = vmatprep.subr.bf16.mxu0 %v1727_v19  ;;  %1120 = vmatprep.subr.bf16.mxu1 %v1732_v20 }
 0x259   : > { %1080 = vmatpush1.bf16.msra.mxu0 %v1741_v21  ;;  %1121 = vmatpush1.bf16.msra.mxu1 %v1746_v22  ;;  %v2102_v21 = vld [vmem:[#allocation9_spill] sm:$0xff] }
 0x25a   : > { %1081 = vmatprep.subr.bf16.mxu0 %v1751_v23  ;;  %1122 = vmatprep.subr.bf16.mxu1 %v1758_v24  ;;  %v2103_v23 = vld [vmem:[#allocation10_spill] sm:$0xff] }
 0x25d   : > { %1082 = vmatpush1.bf16.msra.mxu0 %v1763_v25  ;;  %1123 = vmatpush1.bf16.msra.mxu1 %v1768_v26 }
 0x25e   : > { %1083 = vmatprep.subr.bf16.mxu0 %v1775_v27  ;;  %1124 = vmatprep.subr.bf16.mxu1 %v1782_v28 }
 0x261   : > { %1084 = vmatpush1.bf16.msra.mxu0 %v1788_v30  ;;  %1125 = vmatpush1.bf16.msra.mxu1 %v1795_v31 }
 0x262   : > { %1085 = vmatprep.subr.bf16.mxu0 %v1802_v32  ;;  %1126 = vmatprep.subr.bf16.mxu1 %v1807_v33 }
 0x265   : > { %1086 = vmatpush1.bf16.msra.mxu0 %v1820_v35  ;;  %1127 = vmatpush1.bf16.msra.mxu1 %v1825_v36 }
 0x266   : > { %1087 = vmatprep.subr.bf16.mxu0 %v1832_v37  ;;  %1128 = vmatprep.subr.bf16.mxu1 %v1837_v38 }
 0x269   : > { %1088 = vmatpush1.bf16.msra.mxu0 %v1853_v42  ;;  %1129 = vmatpush1.bf16.msra.mxu1 %v1858_v43 }
 0x26a   : > { %1089 = vmatprep.subr.bf16.mxu0 %v1866_v44  ;;  %1130 = vmatprep.subr.bf16.mxu1 %v1871_v45  ;;  %v1063_v44 = vpop.permute.xlu1 %1062 }
 0x26b   : > { %vm1064_vm7 = vcmp.eq.s32.totalorder %v1063_v44, 1 }
 0x26d   : > { %1090 = vmatpush1.bf16.msra.mxu0 %v1879_v47  ;;  %1131 = vmatpush1.bf16.msra.mxu1 %v1884_v48 }
 0x323   : > { %v981_v13 = vpop.f32.mrb[16].mxu0  ;;  %v1022_v14 = vpop.f32.mrb[16].mxu1 }
 0x324   : > { %v1029_v16 = vadd.f32 %v981_v13, %v2100_v15  ;;  %v1031_v18 = vadd.f32 %v1022_v14, %v2101_v17  ;;  %v983_v19 = vpop.f32.mrb[17].mxu0  ;;  %v1024_v20 = vpop.f32.mrb[17].mxu1 }
 0x325   : > { %v1030_v22 = vadd.f32 %v983_v19, %v2102_v21  ;;  %v1032_v24 = vadd.f32 %v1024_v20, %v2103_v23  ;;  %v985_v25 = vpop.f32.mrb[18].mxu0  ;;  %v1026_v26 = vpop.f32.mrb[18].mxu1 }
 0x326   : > { %v1347_v27 = vmul.f32 -1.442695, %v1029_v16  ;;  %v986_v28 = vpop.f32.mrb[19].mxu0  ;;  %v1027_v30 = vpop.f32.mrb[19].mxu1 }
 0x327   : > { %v1348_v31 = vmul.f32 -1.442695, %v1030_v22  ;;  %v1349_v32 = vmul.f32 -1.442695, %v1032_v24  ;;  %v1191_v15 = vpop.permute.xlu1 %1190 }
 0x328   : > { %1493 = vpow2.f32 %v1347_v27  ;;  %vm1192_vm8 = vcmp.eq.s32.totalorder %v1191_v15, 1 }
 0x329   : > { %1495 = vpow2.f32 %v1348_v31 }
 0x32a   : > { %1497 = vpow2.f32 %v1349_v32 }
 0x32b   : > { %1499 = vtanh.f32 %v1031_v18 }
 0x332   : > { %v1494_v33 = vpop.eup %1493 }
 0x333   : > { %v1496_v35 = vpop.eup %1495  ;;  %v1036_v36 = vadd.f32 1.0, %v1494_v33 }
 0x334   : > { %v1042_v37 = vadd.f32 1.0, %v1496_v35  ;;  %v1498_v38 = vpop.eup %1497 }
 0x335   : > { %1501 = vrcp.f32 %v1036_v36  ;;  %v1500_v42 = vpop.eup %1499  ;;  %v1049_v47 = vadd.f32 1.0, %v1498_v38 }
 0x336   : > { %1503 = vrcp.f32 %v1042_v37 }
 0x337   : > { %1505 = vrcp.f32 %v1049_v47 }
 0x33f   : > { %v1502_v43 = vpop.eup %1501 }
 0x340   : > { %v1504_v45 = vpop.eup %1503  ;;  %v1053_v48 = vmul.f32 %v1502_v43, %v1500_v42 }
 0x341   : > { %v1052_v55 = vmul.f32 %v1504_v45, %v2010_v54  ;;  %v1506_v60 = vpop.eup %1505 }
 0x343   : > { %v1054_v8 = vadd.f32 %v1053_v48, %v1052_v55 }
 0x345   : > { %1507 = vtanh.f32 %v1054_v8  ;;  %v1066_v34 = vsel %vm1064_vm7, %v1054_v8, %v2010_v54 }
 0x34f   : > { %v1508_v61 = vpop.eup %1507 }
 0x350   : > { %v1056_v62 = vmul.f32 %v1508_v61, %v1506_v60 }
 0x352   : > { %v1065_v63 = vsel %vm1064_vm7, %v1056_v62, %v2013_v58 }
 0x353   : > { %v1074_v0 = vpack.c.bf16 %v1065_v63, %v1065_v63 }
 0x355   : > { %1108 = vmatmul.mubr.bf16.vlgmr.msra.gmra.mrb[20].mxu0 %v1074_v0  ;;  %1149 = vmatmul.mubr.bf16.vlgmr.msra.gmra.mrb[20].mxu1 %v1074_v0 }
 0x428   : > { %v1109_v39 = vpop.f32.mrb[20].mxu0  ;;  %v1150_v3 = vpop.f32.mrb[20].mxu1 }
 0x429   : > { %v1157_v10 = vadd.f32 %v1109_v39, %v2104_v1  ;;  %v1159_v9 = vadd.f32 %v1150_v3, %v2105_v40  ;;  %v1111_v46 = vpop.f32.mrb[21].mxu0  ;;  %v1152_v51 = vpop.f32.mrb[21].mxu1 }
 0x42a   : > { %v1158_v7 = vadd.f32 %v1111_v46, %v2106_v5  ;;  %v1160_v53 = vadd.f32 %v1152_v51, %v1955_v6  ;;  %v1113_v57 = vpop.f32.mrb[22].mxu0  ;;  %v1154_v2 = vpop.f32.mrb[22].mxu1 }
 0x42b   : > { %v1350_v4 = vmul.f32 -1.442695, %v1157_v10  ;;  %v1114_v29 = vpop.f32.mrb[23].mxu0  ;;  %v1155_v49 = vpop.f32.mrb[23].mxu1 }
 0x42c   : > { %v1351_v41 = vmul.f32 -1.442695, %v1158_v7  ;;  %v1352_v50 = vmul.f32 -1.442695, %v1160_v53 }
 0x42d   : > { %1509 = vpow2.f32 %v1350_v4 }
 0x42e   : > { %1511 = vpow2.f32 %v1351_v41 }
 0x42f   : > { %1513 = vpow2.f32 %v1352_v50 }
 0x430   : > { %1515 = vtanh.f32 %v1159_v9 }
 0x437   : > { %v1510_v52 = vpop.eup %1509 }
 0x438   : > { %v1512_v54 = vpop.eup %1511  ;;  %v1164_v56 = vadd.f32 1.0, %v1510_v52 }
 0x439   : > { %v1170_v11 = vadd.f32 1.0, %v1512_v54  ;;  %v1514_v12 = vpop.eup %1513 }
 0x43a   : > { %1517 = vrcp.f32 %v1164_v56  ;;  %v1516_v58 = vpop.eup %1515  ;;  %v1177_v14 = vadd.f32 1.0, %v1514_v12 }
 0x43b   : > { %1519 = vrcp.f32 %v1170_v11 }
 0x43c   : > { %1521 = vrcp.f32 %v1177_v14 }
 0x444   : > { %v1518_v6 = vpop.eup %1517 }
 0x445   : > { %v1520_v59 = vpop.eup %1519  ;;  %v1181_v13 = vmul.f32 %v1518_v6, %v1516_v58 }
 0x446   : > { %v1180_v16 = vmul.f32 %v1520_v59, %v1066_v34  ;;  %v1522_v19 = vpop.eup %1521 }
 0x448   : > { %v1182_v17 = vadd.f32 %v1181_v13, %v1180_v16 }
 0x44a   : > { %1523 = vtanh.f32 %v1182_v17  ;;  %v1194_v18 = vsel %vm1192_vm8, %v1182_v17, %v1066_v34 }
 0x44b   : > { %1196 = vst [vmem:[#allocation4] sm:$0xff] %v1194_v18 }
 0x454   : > { %v1524_v20 = vpop.eup %1523 }
 0x455   : > { %v1184_v21 = vmul.f32 %v1524_v20, %v1522_v19 }
 0x457   : > { %v1193_v22 = vsel %vm1192_vm8, %v1184_v21, %v1065_v63 }
 0x458   : > { %1195 = vst [vmem:[#allocation3] sm:$0xff] %v1193_v22  ;;  %1197 = vst [vmem:[%s267_s10] sm:$0xff] %v1193_v22 }
 0x459 PF: > { %s15_s22 = sadd.s32 1, %s1563_s22   ;;  %s2107_s18 = smov %s1555_s20 }
 0x45a   : > { %p12_p8 = scmp.ge.s32.totalorder %s15_s22, 6   ;;  %s2108_s19 = smov %s1559_s21 }
 0x45b   : > { %s2109_s20 = smov %s2112_s23  ;;  %s2110_s21 = smov %s2116_s24 }
 0x45c   :  { %14 = sbr.rel (!%p12_p8) target bundleno = 3 (0x3), region = 81 }

</bundles_post_ra>
